<compile_context>
chip_gen: v7x
topology: tpu7x:2x2x1
jax: 0.10.0
libtpu: 0.0.40
codegen_flags: <defaults>
</compile_context>

<pallas_src>
import functools

import jax
import jax.numpy as jnp
from jax import lax
from jax.experimental import pallas as pl
from jax.experimental.pallas import tpu as pltpu


_MAX_TILE_LANES = 16384   # batch lanes per grid step (~0.6 MiB per f32 (9, tile) buffer)


def _round_up(n, m):
    return ((n + m - 1) // m) * m


def _choose_batch_tile(batch):
    """Large lane-dense batch tile (multiple of 128); >=2 grid steps at large B."""
    if batch <= 512:
        return batch                                    # one full block: always legal
    n_steps = max(4, pl.cdiv(batch, _MAX_TILE_LANES))   # pipelining + both v7x TCs
    return min(_MAX_TILE_LANES, _round_up(pl.cdiv(batch, n_steps), 128))


def autoencoder_kernel(x_ref,                 # (D, tb)  x^T; row 0 = passthrough feature
                       w1_ref, b1_ref,        # (30, D)  col 0 zeroed, (30, 1)
                       w2_ref, b2_ref,        # (D, 30)  row 0 zeroed, (D, 1) row 0 zeroed
                       w3_ref, b3_ref,        # (30, D)  col 0 zeroed, (30, 1)
                       w4_ref, b4_ref,        # (D, 30)  row 0 zeroed, (D, 1) row 0 zeroed
                       out_ref, hid_ref):     # (D, tb)  decoded^T / denoised^T (+ row-0 copy)
    xt = x_ref[...].astype(jnp.float32)                                   # (D, tb)
    D = xt.shape[0]
    # (D, 1) sublane mask selecting the passthrough row; broadcast along lanes.
    is_first_row = lax.broadcasted_iota(jnp.int32, (D, 1), 0) == 0

    hp = lax.Precision.HIGHEST   # exact-ish f32 MXU passes; cheap (K <= 30, kernel is HBM-bound)

    # encoder: Linear -> ReLU -> Linear -> Tanh          (transposed: y^T = W @ x^T)
    # w1 column 0 is zero, so the passthrough feature is ignored (== x[:, 1:]).
    h1 = jnp.maximum(
        jnp.dot(w1_ref[...], xt, precision=hp,
                preferred_element_type=jnp.float32) + b1_ref[...], 0.0)   # (30, tb)
    den = jnp.tanh(
        jnp.dot(w2_ref[...], h1, precision=hp,
                preferred_element_type=jnp.float32) + b2_ref[...])        # (D, tb), row 0 == 0

    # decoder: Linear -> ReLU -> Linear -> Tanh   (w3 col 0 zero -> den row 0 is ignored)
    d1 = jnp.maximum(
        jnp.dot(w3_ref[...], den, precision=hp,
                preferred_element_type=jnp.float32) + b3_ref[...], 0.0)   # (30, tb)
    dec = jnp.tanh(
        jnp.dot(w4_ref[...], d1, precision=hp,
                preferred_element_type=jnp.float32) + b4_ref[...])        # (D, tb), row 0 == 0

    # Fused first-feature passthrough: row 0 takes the input, the rest the results.
    # Full-block, unmasked-lane stores (batch tile is a multiple of 128 or full-extent).
    hid_ref[...] = jnp.where(is_first_row, xt, den).astype(hid_ref.dtype)
    out_ref[...] = jnp.where(is_first_row, xt, dec).astype(out_ref.dtype)


@functools.partial(jax.jit, static_argnames=("io_dtype",))
def autoencoder_forward(x, params, *, io_dtype=jnp.float32):
    """x: (B, input_dim). Returns (output, hidden) exactly like the torch module."""
    B, D = x.shape
    w1, b1, w2, b2, w3, b3, w4, b4 = params   # PyTorch layout: W (out, in), b (out, 1)

    # Tiny trace-level weight padding so the kernel consumes the FULL x^T and
    # produces FULL (D, tb) outputs (no wrapper slice / pad / concat copies).
    h = w1.shape[0]                                        # 30
    zc = jnp.zeros((h, 1), w1.dtype)
    w1p = jnp.concatenate([zc, w1], axis=1)                # (30, D), col 0 = 0
    w3p = jnp.concatenate([zc, w3], axis=1)                # (30, D), col 0 = 0
    zr = jnp.zeros((1, h), w2.dtype)
    w2p = jnp.concatenate([zr, w2], axis=0)                # (D, 30), row 0 = 0
    w4p = jnp.concatenate([zr, w4], axis=0)                # (D, 30), row 0 = 0
    zb = jnp.zeros((1, 1), b2.dtype)
    b2p = jnp.concatenate([zb, b2], axis=0)                # (D, 1),  row 0 = 0
    b4p = jnp.concatenate([zb, b4], axis=0)                # (D, 1),  row 0 = 0

    # Batch on the lane axis.
    xt = jnp.transpose(x).astype(io_dtype)                 # (D, B)

    tile_b = _choose_batch_tile(B)
    grid = (pl.cdiv(B, tile_b),)     # no jnp.pad: Pallas masks the partial last block

    act_spec = pl.BlockSpec((D, tile_b), lambda i: (0, i))
    resident = lambda a: pl.BlockSpec(a.shape, lambda i: (0, 0))   # VMEM-resident weights

    decoded_t, denoised_t = pl.pallas_call(
        autoencoder_kernel,
        out_shape=(jax.ShapeDtypeStruct((D, B), io_dtype),    # decoded^T  (row 0 = passthrough)
                   jax.ShapeDtypeStruct((D, B), io_dtype)),   # denoised^T (row 0 = passthrough)
        grid=grid,
        in_specs=[
            act_spec,
            resident(w1p), resident(b1),
            resident(w2p), resident(b2p),
            resident(w3p), resident(b3),
            resident(w4p), resident(b4p),
        ],
        out_specs=(act_spec, act_spec),
        compiler_params=pltpu.CompilerParams(
            # TODO(synk): on v7x, pltpu.CORE_PARALLEL on the batch axis would
            # guarantee the grid splits across both TensorCores.
            dimension_semantics=(pltpu.PARALLEL,),
            vmem_limit_bytes=32 * 1024 * 1024),   # headroom for 16K-lane tiles on v5e
    )(xt, w1p, b1, w2p, b2p, w3p, b3, w4p, b4p)

    output = jnp.transpose(decoded_t)   # (B, D) = cat(first_feature, decoded)
    hidden = jnp.transpose(denoised_t)  # (B, D) = cat(first_feature, denoised)
    return output, hidden


def init_params(key, input_dim):
    """Deterministic init matching the torch layer shapes: W (out, in), b (out, 1)."""
    d = input_dim - 1
    ks = jax.random.split(key, 8)

    def lin(kw, kb, fan_in, fan_out):
        bound = 1.0 / jnp.sqrt(fan_in)
        w = jax.random.uniform(kw, (fan_out, fan_in), jnp.float32, -bound, bound)
        b = jax.random.uniform(kb, (fan_out, 1), jnp.float32, -bound, bound)
        return w, b

    w1, b1 = lin(ks[0], ks[1], d, 30)    # encoder[0]: Linear(d, 30)
    w2, b2 = lin(ks[2], ks[3], 30, d)    # encoder[2]: Linear(30, d)
    w3, b3 = lin(ks[4], ks[5], d, 30)    # decoder[0]: Linear(d, 30)
    w4, b4 = lin(ks[6], ks[7], 30, d)    # decoder[2]: Linear(30, d)
    return (w1, b1, w2, b2, w3, b3, w4, b4)


def reference_forward(x, params):
    """Pure-JAX reference matching the PyTorch module (x @ W.T + b)."""
    w1, b1, w2, b2, w3, b3, w4, b4 = params
    mm = lambda a, b: jnp.dot(a, b, precision=lax.Precision.HIGHEST)
    first = x[:, 0:1]
    noisy = x[:, 1:]
    h1 = jnp.maximum(mm(noisy, w1.T) + b1.T, 0.0)
    denoised = jnp.tanh(mm(h1, w2.T) + b2.T)
    d1 = jnp.maximum(mm(denoised, w3.T) + b3.T, 0.0)
    decoded = jnp.tanh(mm(d1, w4.T) + b4.T)
    return (jnp.concatenate([first, decoded], axis=1),
            jnp.concatenate([first, denoised], axis=1))


if __name__ == "__main__":
    key = jax.random.PRNGKey(0)
    k_params, k_x1, k_x2 = jax.random.split(key, 3)

    input_dim = 9  # hidden_dim = 8
    params = init_params(k_params, input_dim)

    # Small batch: single full block, no tiling, no padding.
    x_small = jax.random.normal(k_x1, (8, input_dim), jnp.float32)
    out_s, hid_s = jax.block_until_ready(autoencoder_forward(x_small, params))
    ref_out_s, ref_hid_s = reference_forward(x_small, params)
    assert out_s.shape == (8, input_dim) and hid_s.shape == (8, input_dim)
    assert jnp.allclose(out_s, ref_out_s, atol=5e-3, rtol=1e-3), "small-batch output mismatch"
    assert jnp.allclose(hid_s, ref_hid_s, atol=5e-3, rtol=1e-3), "small-batch hidden mismatch"

    # Larger batch: exercises lane-dense tiling + masked partial last block.
    x_big = jax.random.normal(k_x2, (600, input_dim), jnp.float32)
    out_b, hid_b = jax.block_until_ready(autoencoder_forward(x_big, params))
    ref_out_b, ref_hid_b = reference_forward(x_big, params)
    assert out_b.shape == (600, input_dim) and hid_b.shape == (600, input_dim)
    assert jnp.allclose(out_b, ref_out_b, atol=5e-3, rtol=1e-3), "big-batch output mismatch"
    assert jnp.allclose(hid_b, ref_hid_b, atol=5e-3, rtol=1e-3), "big-batch hidden mismatch"

    # Optional bf16 activation I/O (HBM-bound kernel -> ~2x fewer activation bytes).
    out_h, hid_h = jax.block_until_ready(
        autoencoder_forward(x_big, params, io_dtype=jnp.bfloat16))
    assert jnp.allclose(out_h.astype(jnp.float32), ref_out_b, atol=6e-2), "bf16 output drift"
    assert jnp.allclose(hid_h.astype(jnp.float32), ref_hid_b, atol=6e-2), "bf16 hidden drift"

    print("KERNEL_OK")
</pallas_src>

<mosaic_0001>
module attributes {stable_mosaic.version = 11 : i64} {
  func.func @autoencoder_kernel(%arg0: i32, %arg1: memref<9x8xf32, #tpu.memory_space<vmem>>, %arg2: memref<30x9xf32, #tpu.memory_space<vmem>>, %arg3: memref<30x1xf32, #tpu.memory_space<vmem>>, %arg4: memref<9x30xf32, #tpu.memory_space<vmem>>, %arg5: memref<9x1xf32, #tpu.memory_space<vmem>>, %arg6: memref<30x9xf32, #tpu.memory_space<vmem>>, %arg7: memref<30x1xf32, #tpu.memory_space<vmem>>, %arg8: memref<9x30xf32, #tpu.memory_space<vmem>>, %arg9: memref<9x1xf32, #tpu.memory_space<vmem>>, %arg10: memref<9x8xf32, #tpu.memory_space<vmem>>, %arg11: memref<9x8xf32, #tpu.memory_space<vmem>>) attributes {dimension_semantics = [#tpu.dimension_semantics<parallel>], iteration_bounds = array<i64: 1>, scalar_prefetch = 0 : i64, scratch_operands = 0 : i64, tpu.core_type = #tpu.core_type<tc>, window_params = [{transform_indices = @transform_0, window_bounds = array<i64: 9, 8>}, {pipeline_mode = #tpu.pipeline_mode<synchronous>, transform_indices = @transform_1, window_bounds = array<i64: 30, 9>}, {pipeline_mode = #tpu.pipeline_mode<synchronous>, transform_indices = @transform_2, window_bounds = array<i64: 30, 1>}, {pipeline_mode = #tpu.pipeline_mode<synchronous>, transform_indices = @transform_3, window_bounds = array<i64: 9, 30>}, {pipeline_mode = #tpu.pipeline_mode<synchronous>, transform_indices = @transform_4, window_bounds = array<i64: 9, 1>}, {pipeline_mode = #tpu.pipeline_mode<synchronous>, transform_indices = @transform_5, window_bounds = array<i64: 30, 9>}, {pipeline_mode = #tpu.pipeline_mode<synchronous>, transform_indices = @transform_6, window_bounds = array<i64: 30, 1>}, {pipeline_mode = #tpu.pipeline_mode<synchronous>, transform_indices = @transform_7, window_bounds = array<i64: 9, 30>}, {pipeline_mode = #tpu.pipeline_mode<synchronous>, transform_indices = @transform_8, window_bounds = array<i64: 9, 1>}, {transform_indices = @transform_9, window_bounds = array<i64: 9, 8>}, {transform_indices = @transform_10, window_bounds = array<i64: 9, 8>}]} {
    %c0 = arith.constant 0 : index
    %c0_0 = arith.constant 0 : index
    %0 = vector.load %arg1[%c0, %c0_0] : memref<9x8xf32, #tpu.memory_space<vmem>>, vector<9x8xf32>
    %1 = tpu.iota {dimensions = array<i32: 0>} : vector<9x1xi32>
    %c0_i32 = arith.constant 0 : i32
    %2 = vector.broadcast %c0_i32 : i32 to vector<9x1xi32>
    %3 = arith.cmpi eq, %1, %2 : vector<9x1xi32>
    %c0_1 = arith.constant 0 : index
    %c0_2 = arith.constant 0 : index
    %4 = vector.load %arg2[%c0_1, %c0_2] : memref<30x9xf32, #tpu.memory_space<vmem>>, vector<30x9xf32>
    %cst = arith.constant dense<0.000000e+00> : vector<30x8xf32>
    %5 = tpu.matmul %4, %0, %cst {dimension_numbers = #tpu.dot_dimension_numbers<[1], [0], [0], [1], [0, 0, 1, 1], [], []>, precision = #tpu.contract_precision<fp32>} : vector<30x9xf32>, vector<9x8xf32>, vector<30x8xf32> -> vector<30x8xf32>
    %c0_3 = arith.constant 0 : index
    %c0_4 = arith.constant 0 : index
    %6 = vector.load %arg3[%c0_3, %c0_4] : memref<30x1xf32, #tpu.memory_space<vmem>>, vector<30x1xf32>
    %7 = vector.broadcast %6 : vector<30x1xf32> to vector<30x8xf32>
    %8 = arith.addf %5, %7 : vector<30x8xf32>
    %cst_5 = arith.constant 0.000000e+00 : f32
    %9 = vector.broadcast %cst_5 : f32 to vector<30x8xf32>
    %10 = arith.maximumf %8, %9 : vector<30x8xf32>
    %c0_6 = arith.constant 0 : index
    %c0_7 = arith.constant 0 : index
    %11 = vector.load %arg4[%c0_6, %c0_7] : memref<9x30xf32, #tpu.memory_space<vmem>>, vector<9x30xf32>
    %cst_8 = arith.constant dense<0.000000e+00> : vector<9x8xf32>
    %12 = tpu.matmul %11, %10, %cst_8 {dimension_numbers = #tpu.dot_dimension_numbers<[1], [0], [0], [1], [0, 0, 1, 1], [], []>, precision = #tpu.contract_precision<fp32>} : vector<9x30xf32>, vector<30x8xf32>, vector<9x8xf32> -> vector<9x8xf32>
    %c0_9 = arith.constant 0 : index
    %c0_10 = arith.constant 0 : index
    %13 = vector.load %arg5[%c0_9, %c0_10] : memref<9x1xf32, #tpu.memory_space<vmem>>, vector<9x1xf32>
    %14 = vector.broadcast %13 : vector<9x1xf32> to vector<9x8xf32>
    %15 = arith.addf %12, %14 : vector<9x8xf32>
    %16 = math.tanh %15 : vector<9x8xf32>
    %c0_11 = arith.constant 0 : index
    %c0_12 = arith.constant 0 : index
    %17 = vector.load %arg6[%c0_11, %c0_12] : memref<30x9xf32, #tpu.memory_space<vmem>>, vector<30x9xf32>
    %cst_13 = arith.constant dense<0.000000e+00> : vector<30x8xf32>
    %18 = tpu.matmul %17, %16, %cst_13 {dimension_numbers = #tpu.dot_dimension_numbers<[1], [0], [0], [1], [0, 0, 1, 1], [], []>, precision = #tpu.contract_precision<fp32>} : vector<30x9xf32>, vector<9x8xf32>, vector<30x8xf32> -> vector<30x8xf32>
    %c0_14 = arith.constant 0 : index
    %c0_15 = arith.constant 0 : index
    %19 = vector.load %arg7[%c0_14, %c0_15] : memref<30x1xf32, #tpu.memory_space<vmem>>, vector<30x1xf32>
    %20 = vector.broadcast %19 : vector<30x1xf32> to vector<30x8xf32>
    %21 = arith.addf %18, %20 : vector<30x8xf32>
    %cst_16 = arith.constant 0.000000e+00 : f32
    %22 = vector.broadcast %cst_16 : f32 to vector<30x8xf32>
    %23 = arith.maximumf %21, %22 : vector<30x8xf32>
    %c0_17 = arith.constant 0 : index
    %c0_18 = arith.constant 0 : index
    %24 = vector.load %arg8[%c0_17, %c0_18] : memref<9x30xf32, #tpu.memory_space<vmem>>, vector<9x30xf32>
    %cst_19 = arith.constant dense<0.000000e+00> : vector<9x8xf32>
    %25 = tpu.matmul %24, %23, %cst_19 {dimension_numbers = #tpu.dot_dimension_numbers<[1], [0], [0], [1], [0, 0, 1, 1], [], []>, precision = #tpu.contract_precision<fp32>} : vector<9x30xf32>, vector<30x8xf32>, vector<9x8xf32> -> vector<9x8xf32>
    %c0_20 = arith.constant 0 : index
    %c0_21 = arith.constant 0 : index
    %26 = vector.load %arg9[%c0_20, %c0_21] : memref<9x1xf32, #tpu.memory_space<vmem>>, vector<9x1xf32>
    %27 = vector.broadcast %26 : vector<9x1xf32> to vector<9x8xf32>
    %28 = arith.addf %25, %27 : vector<9x8xf32>
    %29 = math.tanh %28 : vector<9x8xf32>
    %30 = vector.shape_cast %3 : vector<9x1xi1> to vector<9x1xi1>
    %31 = vector.broadcast %30 : vector<9x1xi1> to vector<9x8xi1>
    %32 = arith.select %31, %0, %16 : vector<9x8xi1>, vector<9x8xf32>
    %c0_22 = arith.constant 0 : index
    %c0_23 = arith.constant 0 : index
    %33 = vector.load %arg11[%c0_22, %c0_23] : memref<9x8xf32, #tpu.memory_space<vmem>>, vector<9x8xf32>
    tpu.vector_store %arg11[%c0_22, %c0_23], %32 {strides = array<i32>} : memref<9x8xf32, #tpu.memory_space<vmem>>, vector<9x8xf32>,
    %34 = vector.shape_cast %3 : vector<9x1xi1> to vector<9x1xi1>
    %35 = vector.broadcast %34 : vector<9x1xi1> to vector<9x8xi1>
    %36 = arith.select %35, %0, %29 : vector<9x8xi1>, vector<9x8xf32>
    %c0_24 = arith.constant 0 : index
    %c0_25 = arith.constant 0 : index
    %37 = vector.load %arg10[%c0_24, %c0_25] : memref<9x8xf32, #tpu.memory_space<vmem>>, vector<9x8xf32>
    tpu.vector_store %arg10[%c0_24, %c0_25], %36 {strides = array<i32>} : memref<9x8xf32, #tpu.memory_space<vmem>>, vector<9x8xf32>,
    return
  }
  func.func @transform_0(%arg0: i32) -> (i32, i32) {
    %c0_i32 = arith.constant 0 : i32
    %c0_i32_0 = arith.constant 0 : i32
    return %c0_i32, %arg0 : i32, i32
  }
  func.func @transform_1(%arg0: i32) -> (i32, i32) {
    %c0_i32 = arith.constant 0 : i32
    %c0_i32_0 = arith.constant 0 : i32
    %c0_i32_1 = arith.constant 0 : i32
    return %c0_i32, %c0_i32_0 : i32, i32
  }
  func.func @transform_2(%arg0: i32) -> (i32, i32) {
    %c0_i32 = arith.constant 0 : i32
    %c0_i32_0 = arith.constant 0 : i32
    %c0_i32_1 = arith.constant 0 : i32
    return %c0_i32, %c0_i32_0 : i32, i32
  }
  func.func @transform_3(%arg0: i32) -> (i32, i32) {
    %c0_i32 = arith.constant 0 : i32
    %c0_i32_0 = arith.constant 0 : i32
    %c0_i32_1 = arith.constant 0 : i32
    return %c0_i32, %c0_i32_0 : i32, i32
  }
  func.func @transform_4(%arg0: i32) -> (i32, i32) {
    %c0_i32 = arith.constant 0 : i32
    %c0_i32_0 = arith.constant 0 : i32
    %c0_i32_1 = arith.constant 0 : i32
    return %c0_i32, %c0_i32_0 : i32, i32
  }
  func.func @transform_5(%arg0: i32) -> (i32, i32) {
    %c0_i32 = arith.constant 0 : i32
    %c0_i32_0 = arith.constant 0 : i32
    %c0_i32_1 = arith.constant 0 : i32
    return %c0_i32, %c0_i32_0 : i32, i32
  }
  func.func @transform_6(%arg0: i32) -> (i32, i32) {
    %c0_i32 = arith.constant 0 : i32
    %c0_i32_0 = arith.constant 0 : i32
    %c0_i32_1 = arith.constant 0 : i32
    return %c0_i32, %c0_i32_0 : i32, i32
  }
  func.func @transform_7(%arg0: i32) -> (i32, i32) {
    %c0_i32 = arith.constant 0 : i32
    %c0_i32_0 = arith.constant 0 : i32
    %c0_i32_1 = arith.constant 0 : i32
    return %c0_i32, %c0_i32_0 : i32, i32
  }
  func.func @transform_8(%arg0: i32) -> (i32, i32) {
    %c0_i32 = arith.constant 0 : i32
    %c0_i32_0 = arith.constant 0 : i32
    %c0_i32_1 = arith.constant 0 : i32
    return %c0_i32, %c0_i32_0 : i32, i32
  }
  func.func @transform_9(%arg0: i32) -> (i32, i32) {
    %c0_i32 = arith.constant 0 : i32
    %c0_i32_0 = arith.constant 0 : i32
    return %c0_i32, %arg0 : i32, i32
  }
  func.func @transform_10(%arg0: i32) -> (i32, i32) {
    %c0_i32 = arith.constant 0 : i32
    %c0_i32_0 = arith.constant 0 : i32
    return %c0_i32, %arg0 : i32, i32
  }
}

</mosaic_0001>

<bundles_post_ra>
// kernel: autoencoder_forward.1
= control target key start
LH: loop header
LB: loop body
LE: loop exit
PB: predicated region body
PF: predicated region fallthrough
CT: control target
= control target key end

     0   :  { %vm82_vm0 = vcmask 1040384   ;;  %vm69_vm1 = vcmask 72704   ;;  %v3066_v3 = vmov 0   ;;  %vm692_vm2 = vcmask 244736   ;;  %s3392_s0 = inlined_call_operand.vmem [shape: f32[9,8], index: 0, kind: input, shape index: {}]   ;;  %s3393_s1 = inlined_call_operand.vmem [shape: f32[30,9], index: 1, kind: input, shape index: {}]   ;;  %s3394_s2 = inlined_call_operand.vmem [shape: f32[30,1], index: 2, kind: input, shape index: {}]   ;;  %s3395_s4 = inlined_call_operand.vmem [shape: f32[9,1], index: 4, kind: input, shape index: {}]   ;;  %s3396_s6 = inlined_call_operand.vmem [shape: f32[30,1], index: 6, kind: input, shape index: {}]   ;;  %s3397_s8 = inlined_call_operand.vmem [shape: f32[9,1], index: 8, kind: input, shape index: {}]   ;;  %s3398_s3 = inlined_call_operand.vmem [shape: f32[9,30], index: 3, kind: input, shape index: {}]   ;;  %s3399_s5 = inlined_call_operand.vmem [shape: f32[30,9], index: 5, kind: input, shape index: {}]   ;;  %s3400_s10 = inlined_call_operand.vmem [shape: f32[9,8], index: 10, kind: output, shape index: {1}]   ;;  %s3401_s7 = inlined_call_operand.vmem [shape: f32[9,30], index: 7, kind: input, shape index: {}]   ;;  %s3402_s9 = inlined_call_operand.vmem [shape: f32[9,8], index: 9, kind: output, shape index: {0}]  }
   0x1   :  { %v3125_v0 = vld [vmem:[%s3392_s0] sm:$0xff]  ;;  %v35_v1 = vld [vmem:[%s3392_s0 + $0x8] sm:$0x1]  ;;  %3056 = vset.pattern.permute.xlu0 %v3066_v3  ;;  %3057 = vset.pattern.permute.xlu1 %v3066_v3  ;;  %v43_v8 = vld [vmem:[%s3393_s1 + $0x10] sm:$0xff]  ;;  %vm699_vm3 = vcmask 1045504   ;;  %vm2429_vm4 = vcmask 57344  }
   0x2   :  { %v41_v2 = vld [vmem:[%s3393_s1] sm:$0xff]  ;;  %v84_v4 = vsel %vm82_vm0, %v35_v1, 0  ;;  %v87_v5 = vand.u32 4294901760, %v3125_v0  ;;  %v42_v7 = vld [vmem:[%s3393_s1 + $0x8] sm:$0xff]  ;;  %v77_v13 = vsel %vm69_vm1, %v43_v8, 0  ;;  %v47_v28 = vld [vmem:[%s3394_s2 + $0x10] sm:$0xff] }
   0x3   :  { %v71_v6 = vsel %vm69_vm1, %v41_v2, 0  ;;  %v45_v9 = vld [vmem:[%s3394_s2] sm:$0xff]  ;;  %v90_v10 = vand.u32 4294901760, %v84_v4  ;;  %v74_v12 = vsel %vm69_vm1, %v42_v7, 0  ;;  %v44_v14 = vld [vmem:[%s3393_s1 + $0x18] sm:$0x3f] }
   0x4   :  { %v3145_v11 = vand.u32 4294901760, %v71_v6  ;;  %51 = vperm.xlu0 %3056, %v45_v9   ;;  %v3152_v15 = vand.u32 4294901760, %v74_v12  ;;  %v3154_v16 = vand.u32 4294901760, %v77_v13  ;;  %v80_v17 = vsel %vm69_vm1, %v44_v14, 0  ;;  %v48_v19 = vld [vmem:[%s3394_s2 + $0x18] sm:$0x3f] }
   0x5   :  { %v3158_v18 = vsub.f32 %v3125_v0, %v87_v5  ;;  %v46_v20 = vld [vmem:[%s3394_s2 + $0x8] sm:$0xff]  ;;  %v3166_v21 = vpack.c.bf16 %v90_v10, %v87_v5  ;;  %v3171_v23 = vand.u32 4294901760, %v80_v17  ;;  %v3173_v24 = vsub.f32 %v84_v4, %v90_v10  ;;  %66 = vperm.xlu1 %3057, %v48_v19   ;;  %v680_v42 = vld [vmem:[%s3395_s4] sm:$0xff]  ;;  %v1240_v53 = vld [vmem:[%s3396_s6 + $0x18] sm:$0x3f] }
   0x6   :  { %v3169_v22 = vsub.f32 %v71_v6, %v3145_v11  ;;  %v3176_v25 = vsub.f32 %v74_v12, %v3152_v15  ;;  %v3179_v26 = vsub.f32 %v77_v13, %v3154_v16  ;;  %v681_v35 = vld [vmem:[%s3395_s4 + $0x8] sm:$0x1]  ;;  %v1237_v50 = vld [vmem:[%s3396_s6] sm:$0xff]  ;;  %v1239_v54 = vld [vmem:[%s3396_s6 + $0x10] sm:$0xff]  ;;  %vm2427_vm6 = vcmask 64512  }
   0x7   :  { %v196_v27 = vand.u32 4294901760, %v3158_v18  ;;  %2840 = vmatprep.subr.bf16.mxu0 %v3166_v21  ;;  %v3188_v30 = vsub.f32 %v80_v17, %v3171_v23  ;;  %v203_v31 = vand.u32 4294901760, %v3173_v24  ;;  %v2847_v49 = vpack.c.bf16 %v3173_v24, %v3158_v18  ;;  %v1238_v52 = vld [vmem:[%s3396_s6 + $0x8] sm:$0xff]  ;;  %v1870_v55 = vld [vmem:[%s3397_s8] sm:$0xff] }
   0x8   :  { %v155_v29 = vand.u32 4294901760, %v3169_v22  ;;  %56 = vperm.xlu0 %3056, %v46_v20   ;;  %2842 = vmatpush3.bf16.msra.mxu0 %v3166_v21  ;;  %v165_v32 = vand.u32 4294901760, %v3176_v25  ;;  %v175_v33 = vand.u32 4294901760, %v3179_v26  ;;  %v1871_v56 = vld [vmem:[%s3397_s8 + $0x8] sm:$0x1]  ;;  %v678_v58 = vld [vmem:[%s3398_s3] sm:$0xff] }
   0x9   :  { %v197_v34 = vsub.f32 %v3158_v18, %v196_v27  ;;  %v185_v37 = vand.u32 4294901760, %v3188_v30  ;;  %v204_v38 = vsub.f32 %v3173_v24, %v203_v31  ;;  %61 = vperm.xlu1 %3057, %v47_v28   ;;  %v2855_v57 = vpack.c.bf16 %v203_v31, %v196_v27  ;;  %v679_v2 = vld [vmem:[%s3398_s3 + $0x8] sm:$0x1] }
   0xa   :  { %v156_v36 = vsub.f32 %v3169_v22, %v155_v29  ;;  %v166_v39 = vsub.f32 %v3176_v25, %v165_v32  ;;  %v176_v40 = vsub.f32 %v3179_v26, %v175_v33  ;;  %v694_v59 = vsel %vm692_vm2, %v678_v58, 0 }
   0xb   :  { %v198_v41 = vand.u32 4294901760, %v197_v34  ;;  %v186_v44 = vsub.f32 %v3188_v30, %v185_v37  ;;  %v205_v45 = vand.u32 4294901760, %v204_v38  ;;  %v3251_v60 = vand.u32 4294901760, %v694_v59 }
   0xc   :  { %v157_v43 = vand.u32 4294901760, %v156_v36  ;;  %689 = vperm.xlu0 %3056, %v681_v35   ;;  %v167_v46 = vand.u32 4294901760, %v166_v39  ;;  %v177_v47 = vand.u32 4294901760, %v176_v40  ;;  %v697_v4 = vsel %vm692_vm2, %v679_v2, 0 }
   0xd   :  { %v2843_v48 = vpack.c.bf16 %v205_v45, %v198_v41  ;;  %684 = vperm.xlu1 %3057, %v680_v42   ;;  %v187_v51 = vand.u32 4294901760, %v186_v44  ;;  %v3254_v61 = vsub.f32 %v694_v59, %v3251_v60  ;;  %v3264_v5 = vand.u32 4294901760, %v697_v4 }
   0xe   :  { %2591 = vmatprep.mubr.f32.mxu0 %v157_v43 }
   0xf   :  { %2592 = vmatmul.mubr.f32.vlgmr.msra.gmra.mrb[0].mxu0 %v167_v46  ;;  %2844 = vmatprep.subr.bf16.mxu0 %v2843_v48  ;;  %v774_v62 = vand.u32 4294901760, %v3254_v61 }
  0x10   :  { %2594 = vmatprep.mubr.f32.mxu0 %v177_v47  ;;  %2846 = vmatpush3.bf16.msra.mxu0 %v2843_v48 }
  0x11   :  { %1243 = vperm.xlu0 %3056, %v1237_v50   ;;  %2848 = vmatprep.subr.bf16.mxu0 %v2847_v49  ;;  %v775_v63 = vsub.f32 %v3254_v61, %v774_v62 }
  0x12   :  { %1248 = vperm.xlu1 %3057, %v1238_v52  }
  0x13   :  { %2595 = vmatmul.mubr.f32.gmra.mrb[2].mxu0 %v187_v51  ;;  %v776_v1 = vand.u32 4294901760, %v775_v63 }
  0x14   :  { %2601 = vmatprep.mubr.f32.mxu0 %v3145_v11 }
  0x15   :  { %1258 = vperm.xlu0 %3056, %v1240_v53   ;;  %2655 = vmatprep.mubr.f32.mxu1 %v776_v1 }
  0x16   :  { %1253 = vperm.xlu1 %3057, %v1239_v54   ;;  %v1233_v54 = vld [vmem:[%s3399_s5] sm:$0xff] }
  0x17   :  { %2602 = vmatmul.mubr.f32.vlgmr.msra.gmra.mrb[0].mxu0 %v3152_v15 }
  0x18   :  { %2604 = vmatprep.mubr.f32.mxu0 %v3154_v16  ;;  %2850 = vmatpush3.bf16.msra.mxu0 %v2847_v49 }
  0x19   :  { %2852 = vmatprep.subr.bf16.mxu0 %v3166_v21  ;;  %1874 = vperm.xlu0 %3056, %v1870_v55   ;;  %v1262_v55 = vsel %vm69_vm1, %v1233_v54, 0 }
  0x1a   :  { %1879 = vperm.xlu1 %3057, %v1871_v56   ;;  %v3286_v56 = vand.u32 4294901760, %v1262_v55 }
  0x1b   :  { %2605 = vmatmul.mubr.f32.gmra.mrb[2].mxu0 %v3171_v23 }
  0x1c   :  { %2611 = vmatprep.mubr.f32.mxu0 %v3169_v22 }
  0x1f   :  { %2612 = vmatmul.mubr.f32.vlgmr.msra.gmra.mrb[0].mxu0 %v3176_v25 }
  0x20   :  { %2614 = vmatprep.mubr.f32.mxu0 %v3179_v26  ;;  %2854 = vmatpush3.bf16.msra.mxu0 %v3166_v21 }
  0x21   :  { %2856 = vmatprep.subr.bf16.mxu0 %v2855_v57 }
  0x23   :  { %2615 = vmatmul.mubr.f32.gmra.mrb[2].mxu0 %v3188_v30 }
  0x24   :  { %2621 = vmatprep.mubr.f32.mxu0 %v155_v29 }
  0x27   :  { %2622 = vmatmul.mubr.f32.vlgmr.msra.gmra.mrb[0].mxu0 %v165_v32 }
  0x28   :  { %2624 = vmatprep.mubr.f32.mxu0 %v175_v33  ;;  %2858 = vmatpush3.bf16.msra.mxu0 %v2855_v57  ;;  %v3289_v57 = vsub.f32 %v1262_v55, %v3286_v56 }
  0x29   :  { %2860 = vmatprep.subr.bf16.mxu0 %v3166_v21 }
  0x2a   :  { %v1345_v58 = vand.u32 4294901760, %v3289_v57 }
  0x2b   :  { %2625 = vmatmul.mubr.f32.gmra.mrb[2].mxu0 %v185_v37 }
  0x2c   :  { %2631 = vmatprep.mubr.f32.mxu0 %v3145_v11  ;;  %v1346_v59 = vsub.f32 %v3289_v57, %v1345_v58 }
  0x2f   :  { %2632 = vmatmul.mubr.f32.vlgmr.msra.gmra.mrb[0].mxu0 %v3152_v15 }
  0x30   :  { %2634 = vmatprep.mubr.f32.mxu0 %v3154_v16  ;;  %2862 = vmatpush3.bf16.msra.mxu0 %v3166_v21 }
  0x33   :  { %2635 = vmatmul.mubr.f32.gmra.mrb[2].mxu0 %v3171_v23 }
  0x34   :  { %2641 = vmatprep.mubr.f32.mxu0 %v3145_v11  ;;  %v3267_v11 = vsub.f32 %v697_v4, %v3264_v5 }
  0x36   :  { %v784_v20 = vand.u32 4294901760, %v3267_v11 }
  0x37   :  { %2642 = vmatmul.mubr.f32.vlgmr.msra.gmra.mrb[0].mxu0 %v3152_v15 }
  0x38   :  { %2644 = vmatprep.mubr.f32.mxu0 %v3154_v16  ;;  %v785_v30 = vsub.f32 %v3267_v11, %v784_v20 }
  0x3a   :  { %v786_v40 = vand.u32 4294901760, %v785_v30 }
  0x3b   :  { %2645 = vmatmul.mubr.f32.gmra.mrb[2].mxu0 %v3171_v23 }
  0x83   :  { %v52_v3 = vpop.permute.xlu0 %51 }
  0x84   :  { %v67_v6 = vpop.permute.xlu1 %66 }
  0x87   :  { %v57_v7 = vpop.permute.xlu0 %56 }
  0x88   :  { %v62_v16 = vpop.permute.xlu1 %61 }
  0x8b   :  { %v690_v1 = vpop.permute.xlu0 %689 }
  0x90   :  { %v1244_v55 = vpop.permute.xlu0 %1243 }
 0x10a   :  { %v2643_v8 = vpop.f32.mrb[0].mxu0 }
 0x10b   :  { %v2983_v9 = vadd.f32 %v2643_v8, %v57_v7  ;;  %v652_v10 = vpop.f32.mrb[1].mxu0  ;;  %v1236_v7 = vld [vmem:[%s3399_s5 + $0x18] sm:$0x3f] }
 0x10c   :  { %v2984_v12 = vadd.f32 %v652_v10, %v52_v3  ;;  %v685_v3 = vpop.permute.xlu1 %684  ;;  %v36_v10 = vlaneseq }
 0x10d   :  { %v675_v13 = vmax.f32 %v2983_v9, 0.0 }
 0x10e   :  { %v674_v14 = vmax.f32 %v2984_v12, 0.0  ;;  %v2646_v15 = vpop.f32.mrb[2].mxu0  ;;  %v1271_v12 = vsel %vm69_vm1, %v1236_v7, 0 }
 0x10f   :  { %v707_v17 = vand.u32 4294901760, %v675_v13  ;;  %v2985_v18 = vadd.f32 %v2646_v15, %v67_v6  ;;  %v664_v19 = vpop.f32.mrb[3].mxu0  ;;  %v3314_v15 = vshrl.u32 %v36_v10, 7 }
 0x110   :  { %v704_v21 = vand.u32 4294901760, %v674_v14  ;;  %v2986_v22 = vadd.f32 %v664_v19, %v62_v16 }
 0x111   :  { %v801_v23 = vsub.f32 %v675_v13, %v707_v17  ;;  %v677_v24 = vmax.f32 %v2985_v18, 0.0  ;;  %vm39_vm5 = vcmp.eq.s32.totalorder %v3314_v15, 0 }
 0x112   :  { %v2863_v25 = vpack.c.bf16 %v707_v17, %v704_v21  ;;  %v794_v26 = vsub.f32 %v674_v14, %v704_v21  ;;  %v676_v27 = vmax.f32 %v2986_v22, 0.0  ;;  %v3312_v14 = vand.u32 4294901760, %v1271_v12 }
 0x113   :  { %v802_v28 = vand.u32 4294901760, %v801_v23  ;;  %v701_v29 = vsel %vm699_vm3, %v677_v24, 0 }
 0x114   :  { %v795_v31 = vand.u32 4294901760, %v794_v26  ;;  %v713_v32 = vand.u32 4294901760, %v701_v29  ;;  %v710_v33 = vand.u32 4294901760, %v676_v27  ;;  %2864 = vmatprep.subr.bf16.mxu1 %v2863_v25  ;;  %v2879_v34 = vpack.c.bf16 %v801_v23, %v794_v26 }
 0x115   :  { %2866 = vmatpush3.bf16.msra.mxu1 %v2863_v25  ;;  %v803_v35 = vsub.f32 %v801_v23, %v802_v28  ;;  %v1374_v18 = vsub.f32 %v1271_v12, %v3312_v14 }
 0x116   :  { %v815_v36 = vsub.f32 %v701_v29, %v713_v32  ;;  %v2867_v37 = vpack.c.bf16 %v713_v32, %v710_v33  ;;  %v808_v38 = vsub.f32 %v676_v27, %v710_v33  ;;  %v796_v39 = vsub.f32 %v794_v26, %v795_v31 }
 0x117   :  { %v804_v41 = vand.u32 4294901760, %v803_v35  ;;  %v2895_v42 = vpack.c.bf16 %v802_v28, %v795_v31  ;;  %v1375_v27 = vand.u32 4294901760, %v1374_v18 }
 0x118   :  { %v809_v43 = vand.u32 4294901760, %v808_v38  ;;  %2868 = vmatprep.subr.bf16.mxu1 %v2867_v37  ;;  %v797_v44 = vand.u32 4294901760, %v796_v39  ;;  %v816_v45 = vand.u32 4294901760, %v815_v36  ;;  %v2883_v46 = vpack.c.bf16 %v815_v36, %v808_v38 }
 0x119   :  { %2870 = vmatpush3.bf16.msra.mxu1 %v2867_v37  ;;  %v1376_v33 = vsub.f32 %v1374_v18, %v1375_v27 }
 0x11a   :  { %v2871_v47 = vpack.c.bf16 %v804_v41, %v797_v44  ;;  %v810_v48 = vsub.f32 %v808_v38, %v809_v43  ;;  %v817_v49 = vsub.f32 %v815_v36, %v816_v45  ;;  %v2899_v50 = vpack.c.bf16 %v816_v45, %v809_v43  ;;  %v1868_v45 = vld [vmem:[%s3401_s7] sm:$0xff] }
 0x11b   :  { %v1377_v41 = vand.u32 4294901760, %v1376_v33 }
 0x11c   :  { %2656 = vmatmul.mubr.f32.vlgmr.msra.gmra.mrb[0].mxu1 %v786_v40  ;;  %2872 = vmatprep.subr.bf16.mxu1 %v2871_v47  ;;  %v811_v51 = vand.u32 4294901760, %v810_v48  ;;  %v818_v52 = vand.u32 4294901760, %v817_v49 }
 0x11d   :  { %2874 = vmatpush3.bf16.msra.mxu1 %v2871_v47  ;;  %2666 = vmatprep.mubr.f32.mxu1 %v3251_v60 }
 0x11e   :  { %v2875_v53 = vpack.c.bf16 %v818_v52, %v811_v51  ;;  %v1869_v52 = vld [vmem:[%s3401_s7 + $0x8] sm:$0x1] }
 0x120   :  { %2876 = vmatprep.subr.bf16.mxu1 %v2875_v53 }
 0x121   :  { %2878 = vmatpush3.bf16.msra.mxu1 %v2875_v53  ;;  %v1886_v53 = vsel %vm692_vm2, %v1869_v52, 0 }
 0x122   :  { %2880 = vmatprep.subr.bf16.mxu1 %v2879_v34  ;;  %v3363_v54 = vand.u32 4294901760, %v1886_v53 }
 0x124   :  { %2667 = vmatmul.mubr.f32.vlgmr.msra.gmra.mrb[0].mxu1 %v3264_v5 }
 0x125   :  { %2882 = vmatpush3.bf16.msra.mxu1 %v2879_v34  ;;  %2677 = vmatprep.mubr.f32.mxu1 %v3254_v61  ;;  %v1234_v61 = vld [vmem:[%s3399_s5 + $0x8] sm:$0xff] }
 0x126   :  { %2884 = vmatprep.subr.bf16.mxu1 %v2883_v46  ;;  %v1265_v63 = vsel %vm69_vm1, %v1234_v61, 0 }
 0x127   :  { %v3306_v9 = vand.u32 4294901760, %v1265_v63 }
 0x129   :  { %2886 = vmatpush3.bf16.msra.mxu1 %v2883_v46  ;;  %v1354_v13 = vsub.f32 %v1265_v63, %v3306_v9  ;;  %v1883_v46 = vsel %vm692_vm2, %v1868_v45, 0  ;;  %v1259_v63 = vpop.permute.xlu0 %1258 }
 0x12a   :  { %2888 = vmatprep.subr.bf16.mxu1 %v2863_v25  ;;  %v3350_v47 = vand.u32 4294901760, %v1883_v46 }
 0x12b   :  { %v1355_v17 = vand.u32 4294901760, %v1354_v13 }
 0x12c   :  { %2678 = vmatmul.mubr.f32.vlgmr.msra.gmra.mrb[0].mxu1 %v3267_v11  ;;  %v3353_v48 = vsub.f32 %v1883_v46, %v3350_v47 }
 0x12d   :  { %2890 = vmatpush3.bf16.msra.mxu1 %v2863_v25  ;;  %2688 = vmatprep.mubr.f32.mxu1 %v774_v62  ;;  %v1235_v62 = vld [vmem:[%s3399_s5 + $0x10] sm:$0xff]  ;;  %v1356_v23 = vsub.f32 %v1354_v13, %v1355_v17 }
 0x12e   :  { %2892 = vmatprep.subr.bf16.mxu1 %v2867_v37  ;;  %v1268_v6 = vsel %vm69_vm1, %v1235_v62, 0  ;;  %v1962_v49 = vand.u32 4294901760, %v3353_v48 }
 0x12f   :  { %v3308_v11 = vand.u32 4294901760, %v1268_v6  ;;  %v1357_v32 = vand.u32 4294901760, %v1356_v23 }
 0x131   :  { %2894 = vmatpush3.bf16.msra.mxu1 %v2867_v37  ;;  %v1364_v16 = vsub.f32 %v1268_v6, %v3308_v11 }
 0x132   :  { %2896 = vmatprep.subr.bf16.mxu1 %v2895_v42 }
 0x133   :  { %v1365_v19 = vand.u32 4294901760, %v1364_v16 }
 0x134   :  { %2689 = vmatmul.mubr.f32.vlgmr.msra.gmra.mrb[0].mxu1 %v784_v20 }
 0x135   :  { %2898 = vmatpush3.bf16.msra.mxu1 %v2895_v42  ;;  %2699 = vmatprep.mubr.f32.mxu1 %v3251_v60  ;;  %v1366_v28 = vsub.f32 %v1364_v16, %v1365_v19 }
 0x136   :  { %2900 = vmatprep.subr.bf16.mxu1 %v2899_v50 }
 0x139   :  { %2902 = vmatpush3.bf16.msra.mxu1 %v2899_v50  ;;  %v1963_v50 = vsub.f32 %v3353_v48, %v1962_v49 }
 0x13a   :  { %2904 = vmatprep.subr.bf16.mxu1 %v2863_v25 }
 0x13b   :  { %v1964_v51 = vand.u32 4294901760, %v1963_v50 }
 0x13c   :  { %2700 = vmatmul.mubr.f32.vlgmr.msra.gmra.mrb[0].mxu1 %v3264_v5 }
 0x13d   :  { %2906 = vmatpush3.bf16.msra.mxu1 %v2863_v25  ;;  %2710 = vmatprep.mubr.f32.mxu1 %v3251_v60  ;;  %v1347_v60 = vand.u32 4294901760, %v1346_v59 }
 0x13e   :  { %2908 = vmatprep.subr.bf16.mxu1 %v2867_v37 }
 0x13f   :  { %2717 = vmatprep.mubr.f32.mxu0 %v1347_v60  ;;  %v3366_v60 = vsub.f32 %v1886_v53, %v3363_v54 }
 0x141   :  { %2910 = vmatpush3.bf16.msra.mxu1 %v2867_v37  ;;  %v1367_v37 = vand.u32 4294901760, %v1366_v28  ;;  %v1972_v7 = vand.u32 4294901760, %v3366_v60 }
 0x144   :  { %2711 = vmatmul.mubr.f32.vlgmr.msra.gmra.mrb[0].mxu1 %v3264_v5 }
 0x145   :  { %2781 = vmatprep.mubr.f32.mxu1 %v1964_v51 }
 0x217   :  { %v2712_v2 = vpop.f32.mrb[0].mxu1 }
 0x218   :  { %v2987_v4 = vadd.f32 %v2712_v2, %v690_v1  ;;  %v1221_v5 = vpop.f32.mrb[1].mxu1 }
 0x219   :  { %v2988_v8 = vadd.f32 %v1221_v5, %v685_v3 }
 0x21a   :  { %3058 = vtanh.f32 %v2987_v4 }
 0x21b   :  { %3060 = vtanh.f32 %v2988_v8 }
 0x224   :  { %v3059_v20 = vpop.eup %3058 }
 0x225   :  { %v3061_v21 = vpop.eup %3060  ;;  %v1274_v22 = vsel %vm82_vm0, %v3059_v20, 0  ;;  %2430 = vst.msk [vmem:[%s3400_s10 + $0x8] sm:$0x1] %vm2429_vm4, %v3059_v20 }
 0x226   :  { %v1280_v24 = vand.u32 4294901760, %v1274_v22  ;;  %v2425_v25 = vsel %vm39_vm5, %v3125_v0, %v3061_v21  ;;  %v1277_v26 = vand.u32 4294901760, %v3061_v21 }
 0x227   :  { %2428 = vst.msk [vmem:[%s3400_s10] sm:$0xff] %vm2427_vm6, %v2425_v25 }
 0x228   :  { %v2911_v29 = vpack.c.bf16 %v1280_v24, %v1277_v26  ;;  %v1385_v30 = vsub.f32 %v3061_v21, %v1277_v26  ;;  %v1392_v31 = vsub.f32 %v1274_v22, %v1280_v24 }
 0x22a   :  { %2912 = vmatprep.subr.bf16.mxu0 %v2911_v29  ;;  %v1386_v34 = vand.u32 4294901760, %v1385_v30  ;;  %v1393_v35 = vand.u32 4294901760, %v1392_v31  ;;  %v2919_v36 = vpack.c.bf16 %v1392_v31, %v1385_v30 }
 0x22b   :  { %2914 = vmatpush3.bf16.msra.mxu0 %v2911_v29 }
 0x22c   :  { %v1387_v38 = vsub.f32 %v1385_v30, %v1386_v34  ;;  %v1394_v39 = vsub.f32 %v1392_v31, %v1393_v35  ;;  %v2927_v40 = vpack.c.bf16 %v1393_v35, %v1386_v34 }
 0x22e   :  { %2718 = vmatmul.mubr.f32.vlgmr.msra.gmra.mrb[4].mxu0 %v1357_v32  ;;  %v1388_v42 = vand.u32 4294901760, %v1387_v38  ;;  %v1395_v43 = vand.u32 4294901760, %v1394_v39 }
 0x22f   :  { %2720 = vmatprep.mubr.f32.mxu0 %v1367_v37 }
 0x230   :  { %v2915_v44 = vpack.c.bf16 %v1395_v43, %v1388_v42 }
 0x232   :  { %2721 = vmatmul.mubr.f32.gmra.mrb[6].mxu0 %v1377_v41  ;;  %2916 = vmatprep.subr.bf16.mxu0 %v2915_v44 }
 0x233   :  { %2918 = vmatpush3.bf16.msra.mxu0 %v2915_v44  ;;  %2727 = vmatprep.mubr.f32.mxu0 %v3286_v56  ;;  %v1875_v44 = vpop.permute.xlu0 %1874 }
 0x234   :  { %2920 = vmatprep.subr.bf16.mxu0 %v2919_v36 }
 0x236   :  { %2728 = vmatmul.mubr.f32.vlgmr.msra.gmra.mrb[4].mxu0 %v3306_v9 }
 0x237   :  { %2922 = vmatpush3.bf16.msra.mxu0 %v2919_v36  ;;  %2730 = vmatprep.mubr.f32.mxu0 %v3308_v11 }
 0x238   :  { %2924 = vmatprep.subr.bf16.mxu0 %v2911_v29 }
 0x23a   :  { %2731 = vmatmul.mubr.f32.gmra.mrb[6].mxu0 %v3312_v14 }
 0x23b   :  { %2737 = vmatprep.mubr.f32.mxu0 %v3289_v57 }
 0x23e   :  { %2738 = vmatmul.mubr.f32.vlgmr.msra.gmra.mrb[4].mxu0 %v1354_v13 }
 0x23f   :  { %2926 = vmatpush3.bf16.msra.mxu0 %v2911_v29  ;;  %2740 = vmatprep.mubr.f32.mxu0 %v1364_v16 }
 0x240   :  { %2928 = vmatprep.subr.bf16.mxu0 %v2927_v40 }
 0x242   :  { %2741 = vmatmul.mubr.f32.gmra.mrb[6].mxu0 %v1374_v18  ;;  %v1973_v18 = vsub.f32 %v3366_v60, %v1972_v7 }
 0x243   :  { %2747 = vmatprep.mubr.f32.mxu0 %v1345_v58 }
 0x244   :  { %v1974_v28 = vand.u32 4294901760, %v1973_v18 }
 0x246   :  { %2748 = vmatmul.mubr.f32.vlgmr.msra.gmra.mrb[4].mxu0 %v1355_v17 }
 0x247   :  { %2930 = vmatpush3.bf16.msra.mxu0 %v2927_v40  ;;  %2750 = vmatprep.mubr.f32.mxu0 %v1365_v19 }
 0x248   :  { %2932 = vmatprep.subr.bf16.mxu0 %v2911_v29 }
 0x24a   :  { %2751 = vmatmul.mubr.f32.gmra.mrb[6].mxu0 %v1375_v27 }
 0x24b   :  { %2757 = vmatprep.mubr.f32.mxu0 %v3286_v56 }
 0x24e   :  { %2758 = vmatmul.mubr.f32.vlgmr.msra.gmra.mrb[4].mxu0 %v3306_v9 }
 0x24f   :  { %2934 = vmatpush3.bf16.msra.mxu0 %v2911_v29  ;;  %2760 = vmatprep.mubr.f32.mxu0 %v3308_v11 }
 0x252   :  { %2761 = vmatmul.mubr.f32.gmra.mrb[6].mxu0 %v3312_v14 }
 0x253   :  { %2767 = vmatprep.mubr.f32.mxu0 %v3286_v56  ;;  %v1249_v56 = vpop.permute.xlu1 %1248 }
 0x256   :  { %2768 = vmatmul.mubr.f32.vlgmr.msra.gmra.mrb[4].mxu0 %v3306_v9 }
 0x257   :  { %2770 = vmatprep.mubr.f32.mxu0 %v3308_v11  ;;  %v1254_v3 = vpop.permute.xlu1 %1253 }
 0x25a   :  { %2771 = vmatmul.mubr.f32.gmra.mrb[6].mxu0 %v3312_v14 }
 0x25b   :  { %v1880_v42 = vpop.permute.xlu1 %1879 }
 0x329   :  { %v2769_v57 = vpop.f32.mrb[4].mxu0 }
 0x32a   :  { %v2989_v58 = vadd.f32 %v2769_v57, %v1249_v56  ;;  %v1842_v59 = vpop.f32.mrb[5].mxu0 }
 0x32b   :  { %v2990_v61 = vadd.f32 %v1842_v59, %v1244_v55 }
 0x32c   :  { %v1865_v62 = vmax.f32 %v2989_v58, 0.0 }
 0x32d   :  { %v1864_v1 = vmax.f32 %v2990_v61, 0.0  ;;  %v2772_v2 = vpop.f32.mrb[6].mxu0 }
 0x32e   :  { %v1895_v4 = vand.u32 4294901760, %v1865_v62  ;;  %v2991_v5 = vadd.f32 %v2772_v2, %v1259_v63  ;;  %v1854_v6 = vpop.f32.mrb[7].mxu0 }
 0x32f   :  { %v1892_v8 = vand.u32 4294901760, %v1864_v1  ;;  %v2992_v9 = vadd.f32 %v1854_v6, %v1254_v3 }
 0x330   :  { %v1989_v10 = vsub.f32 %v1865_v62, %v1895_v4  ;;  %v1867_v11 = vmax.f32 %v2991_v5, 0.0 }
 0x331   :  { %v2935_v12 = vpack.c.bf16 %v1895_v4, %v1892_v8  ;;  %v1982_v13 = vsub.f32 %v1864_v1, %v1892_v8  ;;  %v1866_v14 = vmax.f32 %v2992_v9, 0.0 }
 0x332   :  { %v1990_v16 = vand.u32 4294901760, %v1989_v10  ;;  %v1889_v17 = vsel %vm699_vm3, %v1867_v11, 0 }
 0x333   :  { %v1983_v19 = vand.u32 4294901760, %v1982_v13  ;;  %v1901_v20 = vand.u32 4294901760, %v1889_v17  ;;  %v1898_v21 = vand.u32 4294901760, %v1866_v14  ;;  %2936 = vmatprep.subr.bf16.mxu1 %v2935_v12  ;;  %v2951_v22 = vpack.c.bf16 %v1989_v10, %v1982_v13 }
 0x334   :  { %2938 = vmatpush3.bf16.msra.mxu1 %v2935_v12  ;;  %v1991_v23 = vsub.f32 %v1989_v10, %v1990_v16 }
 0x335   :  { %v2003_v24 = vsub.f32 %v1889_v17, %v1901_v20  ;;  %v2939_v25 = vpack.c.bf16 %v1901_v20, %v1898_v21  ;;  %v1996_v26 = vsub.f32 %v1866_v14, %v1898_v21  ;;  %v1984_v27 = vsub.f32 %v1982_v13, %v1983_v19 }
 0x336   :  { %v1992_v29 = vand.u32 4294901760, %v1991_v23  ;;  %v2967_v30 = vpack.c.bf16 %v1990_v16, %v1983_v19 }
 0x337   :  { %v1997_v31 = vand.u32 4294901760, %v1996_v26  ;;  %2940 = vmatprep.subr.bf16.mxu1 %v2939_v25  ;;  %v1985_v32 = vand.u32 4294901760, %v1984_v27  ;;  %v2004_v33 = vand.u32 4294901760, %v2003_v24  ;;  %v2955_v34 = vpack.c.bf16 %v2003_v24, %v1996_v26 }
 0x338   :  { %2942 = vmatpush3.bf16.msra.mxu1 %v2939_v25 }
 0x339   :  { %v2943_v35 = vpack.c.bf16 %v1992_v29, %v1985_v32  ;;  %v1998_v36 = vsub.f32 %v1996_v26, %v1997_v31  ;;  %v2005_v37 = vsub.f32 %v2003_v24, %v2004_v33  ;;  %v2971_v38 = vpack.c.bf16 %v2004_v33, %v1997_v31 }
 0x33b   :  { %2782 = vmatmul.mubr.f32.vlgmr.msra.gmra.mrb[2].mxu1 %v1974_v28  ;;  %2944 = vmatprep.subr.bf16.mxu1 %v2943_v35  ;;  %v1999_v39 = vand.u32 4294901760, %v1998_v36  ;;  %v2006_v40 = vand.u32 4294901760, %v2005_v37 }
 0x33c   :  { %2946 = vmatpush3.bf16.msra.mxu1 %v2943_v35  ;;  %2792 = vmatprep.mubr.f32.mxu1 %v3350_v47 }
 0x33d   :  { %v2947_v41 = vpack.c.bf16 %v2006_v40, %v1999_v39 }
 0x33f   :  { %2948 = vmatprep.subr.bf16.mxu1 %v2947_v41 }
 0x340   :  { %2950 = vmatpush3.bf16.msra.mxu1 %v2947_v41 }
 0x341   :  { %2952 = vmatprep.subr.bf16.mxu1 %v2951_v22 }
 0x343   :  { %2793 = vmatmul.mubr.f32.vlgmr.msra.gmra.mrb[2].mxu1 %v3363_v54 }
 0x344   :  { %2954 = vmatpush3.bf16.msra.mxu1 %v2951_v22  ;;  %2803 = vmatprep.mubr.f32.mxu1 %v3353_v48 }
 0x345   :  { %2956 = vmatprep.subr.bf16.mxu1 %v2955_v34 }
 0x348   :  { %2958 = vmatpush3.bf16.msra.mxu1 %v2955_v34 }
 0x349   :  { %2960 = vmatprep.subr.bf16.mxu1 %v2935_v12 }
 0x34b   :  { %2804 = vmatmul.mubr.f32.vlgmr.msra.gmra.mrb[2].mxu1 %v3366_v60 }
 0x34c   :  { %2962 = vmatpush3.bf16.msra.mxu1 %v2935_v12  ;;  %2814 = vmatprep.mubr.f32.mxu1 %v1962_v49 }
 0x34d   :  { %2964 = vmatprep.subr.bf16.mxu1 %v2939_v25 }
 0x350   :  { %2966 = vmatpush3.bf16.msra.mxu1 %v2939_v25 }
 0x351   :  { %2968 = vmatprep.subr.bf16.mxu1 %v2967_v30 }
 0x353   :  { %2815 = vmatmul.mubr.f32.vlgmr.msra.gmra.mrb[2].mxu1 %v1972_v7 }
 0x354   :  { %2970 = vmatpush3.bf16.msra.mxu1 %v2967_v30  ;;  %2825 = vmatprep.mubr.f32.mxu1 %v3350_v47 }
 0x355   :  { %2972 = vmatprep.subr.bf16.mxu1 %v2971_v38 }
 0x358   :  { %2974 = vmatpush3.bf16.msra.mxu1 %v2971_v38 }
 0x359   :  { %2976 = vmatprep.subr.bf16.mxu1 %v2935_v12 }
 0x35b   :  { %2826 = vmatmul.mubr.f32.vlgmr.msra.gmra.mrb[2].mxu1 %v3363_v54 }
 0x35c   :  { %2978 = vmatpush3.bf16.msra.mxu1 %v2935_v12  ;;  %2836 = vmatprep.mubr.f32.mxu1 %v3350_v47 }
 0x35d   :  { %2980 = vmatprep.subr.bf16.mxu1 %v2939_v25 }
 0x360   :  { %2982 = vmatpush3.bf16.msra.mxu1 %v2939_v25 }
 0x363   :  { %2837 = vmatmul.mubr.f32.vlgmr.msra.gmra.mrb[2].mxu1 %v3363_v54 }
 0x436   :  { %v2838_v43 = vpop.f32.mrb[2].mxu1 }
 0x437   :  { %v2993_v45 = vadd.f32 %v2838_v43, %v1880_v42  ;;  %v2409_v46 = vpop.f32.mrb[3].mxu1 }
 0x438   :  { %v2994_v48 = vadd.f32 %v2409_v46, %v1875_v44 }
 0x439   :  { %3062 = vtanh.f32 %v2993_v45 }
 0x43a   :  { %3064 = vtanh.f32 %v2994_v48 }
 0x443   :  { %v3063_v49 = vpop.eup %3062 }
 0x444   :  { %v3065_v50 = vpop.eup %3064  ;;  %2434 = vst.msk [vmem:[%s3402_s9 + $0x8] sm:$0x1] %vm2429_vm4, %v3063_v49 }
 0x445   :  { %v2431_v47 = vsel %vm39_vm5, %v3125_v0, %v3065_v50 }
 0x446   :  { %2433 = vst.msk [vmem:[%s3402_s9] sm:$0xff] %vm2427_vm6, %v2431_v47 }

</bundles_post_ra>
